<compile_context>
chip_gen: v6e
topology: v6e:2x2x1
jax: 0.10.0
libtpu: 0.0.40
codegen_flags: <defaults>
</compile_context>

<pallas_src>
import functools

import jax
import jax.numpy as jnp
import numpy as np
from jax import lax
from jax.experimental import pallas as pl
from jax.experimental.pallas import tpu as pltpu


# ----------------------------------------------------------------------------
# Static parameter helpers (mirror Downsample.__init__)
# ----------------------------------------------------------------------------
_FILT_1D = {
    1: [1.0],
    2: [1.0, 1.0],
    3: [1.0, 2.0, 1.0],
    4: [1.0, 3.0, 3.0, 1.0],
    5: [1.0, 4.0, 6.0, 4.0, 1.0],
    6: [1.0, 5.0, 10.0, 10.0, 5.0, 1.0],
    7: [1.0, 6.0, 15.0, 20.0, 15.0, 6.0, 1.0],
}

_PAD_MODE = {"reflect": "reflect", "refl": "reflect",
             "replicate": "edge", "repl": "edge", "zero": "zero"}
_JNP_PAD_MODE = {"reflect": "reflect", "edge": "edge", "zero": "constant"}


def make_pad_sizes(filt_size, pad_off=0):
    # [left, right, top, bottom] exactly as in Downsample.__init__.
    p0 = int(1.0 * (filt_size - 1) / 2)
    p1 = int(np.ceil(1.0 * (filt_size - 1) / 2))
    return [p0 + pad_off, p1 + pad_off, p0 + pad_off, p1 + pad_off]


def _pad_src(pos, size, mode):
    """Source index in [0, size) for an (out-of-range) position; None -> zero pad."""
    if 0 <= pos < size:
        return pos
    if mode == "reflect":
        # Same restriction as nn.ReflectionPad2d: pad < size (fine for fs <= 7).
        return -pos if pos < 0 else 2 * (size - 1) - pos
    if mode == "edge":
        return 0 if pos < 0 else size - 1
    return None  # zero padding


def _make_band_matrix(out_size, in_size, fs, stride, pad_before, a_hat, mode):
    """Banded matrix S (out_size, in_size) with stride + padding folded in:
    out[o] = sum_src S[o, src] * x[src]  ==  sum_t a_hat[t] * pad(x)[o*stride + t]."""
    S = np.zeros((out_size, in_size), dtype=np.float64)
    for o in range(out_size):
        for t in range(fs):
            pos = o * stride + t - pad_before          # coordinate in unpadded input
            src = _pad_src(pos, in_size, mode)
            if src is not None:
                S[o, src] += a_hat[t]
    return S


def _choose_channel_block(N, C, H, W, Ho, Wo, itemsize,
                          target_bytes=1 << 20, min_steps=8):
    """Largest divisor of C such that (a) the in+out block stays under
    target_bytes and (b) the grid keeps >= min_steps steps for pipelining /
    megacore.  Falls back to 1 (per-channel blocks) otherwise."""
    best = 1
    for d in range(1, C + 1):
        if C % d:
            continue
        block_bytes = d * (H * W + Ho * Wo) * itemsize
        if block_bytes <= target_bytes and (N * C) // d >= min_steps:
            best = max(best, d)
    return best


def _vmem_limit_bytes():
    """Generation-aware scoped VMEM limit: 32 MiB on v7x, 48 MiB on v5e/v6e."""
    cap = 64 << 20
    try:
        info = pltpu.get_tpu_info()
        cap = int(getattr(info, "vmem_capacity_bytes", cap))
    except Exception:
        pass
    return int(min(cap // 2, 48 << 20))


# ----------------------------------------------------------------------------
# Pallas kernel: per-channel banded MXU matmuls (pad + stride folded into S)
# ----------------------------------------------------------------------------
def _blurpool_kernel(s_h_ref, s_wt_ref, x_ref, o_ref, *, cb):
    """One (batch, channel-block) step.

    s_h_ref : (Ho, H)        H-pass band matrix (f32)
    s_wt_ref: (W, Wo)        W-pass band matrix, transposed (input dtype / f32)
    x_ref   : (1, cb, H, W)  input block, W on lanes, H on sublanes
    o_ref   : (1, cb, Ho, Wo)
    """
    s_h = s_h_ref[...]
    s_wt = s_wt_ref[...]
    for c in range(cb):                                   # cb is small & static
        x = x_ref[0, c]                                   # (H, W) — no dtype copy
        # W pass first (stride-reducing): contraction on the lane axis of x.
        y1 = jnp.dot(x, s_wt, preferred_element_type=jnp.float32)   # (H, Wo)
        # H pass on the narrowed plane: contraction on the sublane axis of y1.
        y = jnp.dot(s_h, y1, preferred_element_type=jnp.float32)    # (Ho, Wo)
        o_ref[0, c] = y.astype(o_ref.dtype)


# ----------------------------------------------------------------------------
# Wrapper: Downsample.forward
# ----------------------------------------------------------------------------
def downsample_forward(x, *, filt_size=3, stride=2, pad_off=0,
                       pad_type="reflect"):
    """Pallas implementation of Downsample.forward.  x: (N, C, H, W)."""
    N, C, H, W = x.shape
    pad_l, pad_r, pad_t, pad_b = make_pad_sizes(filt_size, pad_off)
    mode = _PAD_MODE[pad_type]

    if filt_size == 1:
        # Pure subsampling path — no multiply/accumulate to kernelize.
        if pad_off == 0:
            return x[:, :, ::stride, ::stride]
        xp = jnp.pad(x, ((0, 0), (0, 0), (pad_t, pad_b), (pad_l, pad_r)),
                     mode=_JNP_PAD_MODE[mode])
        return xp[:, :, ::stride, ::stride]

    a = np.asarray(_FILT_1D[filt_size], dtype=np.float64)
    a_hat = a / a.sum()          # outer(a_hat,a_hat) == outer(a,a)/sum(outer(a,a))

    Hp, Wp = H + pad_t + pad_b, W + pad_l + pad_r
    Ho = (Hp - filt_size) // stride + 1
    Wo = (Wp - filt_size) // stride + 1

    # Compile-time constant band matrices (padding + stride folded in).
    S_h = _make_band_matrix(Ho, H, filt_size, stride, pad_t, a_hat, mode)  # (Ho,H)
    S_w = _make_band_matrix(Wo, W, filt_size, stride, pad_l, a_hat, mode)  # (Wo,W)
    s_in_dtype = x.dtype if x.dtype == jnp.bfloat16 else jnp.float32
    s_h = jnp.asarray(S_h, dtype=jnp.float32)            # (Ho, H)
    s_wt = jnp.asarray(S_w.T, dtype=s_in_dtype)          # (W, Wo)

    cb = _choose_channel_block(N, C, H, W, Ho, Wo, x.dtype.itemsize)
    # TODO(synk): very large single-channel planes (>~8 MiB) would additionally
    # need an output-H tile axis with an fs-1 row halo; not needed for typical
    # feature-map sizes so it is left untiled along H here.

    kernel = functools.partial(_blurpool_kernel, cb=cb)

    flops = 2 * N * C * (H * W * Wo + Ho * H * Wo)           # W pass + H pass MACs
    bytes_accessed = (N * C * (H * W + Ho * Wo) * x.dtype.itemsize
                      + (Ho * H + W * Wo) * 4)

    y = pl.pallas_call(
        kernel,
        out_shape=jax.ShapeDtypeStruct((N, C, Ho, Wo), x.dtype),
        grid=(N, C // cb),
        in_specs=[
            pl.BlockSpec((Ho, H), lambda n, c: (0, 0)),          # S_h (resident)
            pl.BlockSpec((W, Wo), lambda n, c: (0, 0)),          # S_w^T (resident)
            pl.BlockSpec((1, cb, H, W), lambda n, c: (n, c, 0, 0)),
        ],
        out_specs=pl.BlockSpec((1, cb, Ho, Wo), lambda n, c: (n, c, 0, 0)),
        compiler_params=pltpu.CompilerParams(
            dimension_semantics=("parallel", "parallel"),
            vmem_limit_bytes=_vmem_limit_bytes()),
        cost_estimate=pl.CostEstimate(
            flops=flops, transcendentals=0, bytes_accessed=bytes_accessed),
    )(s_h, s_wt, x)

    return y


# ----------------------------------------------------------------------------
# Pure-JAX reference (matches F.conv2d(pad(x), filt, stride, groups=C))
# ----------------------------------------------------------------------------
def downsample_reference(x, *, filt_size=3, stride=2, pad_off=0,
                         pad_type="reflect"):
    N, C, H, W = x.shape
    pad_l, pad_r, pad_t, pad_b = make_pad_sizes(filt_size, pad_off)
    mode = _JNP_PAD_MODE[_PAD_MODE[pad_type]]
    if filt_size == 1:
        if pad_off == 0:
            return x[:, :, ::stride, ::stride]
        xp = jnp.pad(x, ((0, 0), (0, 0), (pad_t, pad_b), (pad_l, pad_r)), mode=mode)
        return xp[:, :, ::stride, ::stride]
    a = np.asarray(_FILT_1D[filt_size], dtype=np.float64)
    f2 = np.outer(a, a)
    f2 = (f2 / f2.sum()).astype(np.float32)
    w = jnp.asarray(np.tile(f2[None, None], (C, 1, 1, 1)))          # (C,1,fs,fs)
    xp = jnp.pad(x, ((0, 0), (0, 0), (pad_t, pad_b), (pad_l, pad_r)), mode=mode)
    return lax.conv_general_dilated(
        xp, w, window_strides=(stride, stride), padding="VALID",
        dimension_numbers=("NCHW", "OIHW", "NCHW"), feature_group_count=C)


if __name__ == "__main__":
    key = jax.random.PRNGKey(0)
    cases = [
        dict(shape=(2, 4, 16, 16), filt_size=3, stride=2, pad_type="reflect"),
        dict(shape=(2, 4, 15, 15), filt_size=3, stride=2, pad_type="reflect"),
        dict(shape=(1, 4, 16, 16), filt_size=5, stride=2, pad_type="reflect"),
        dict(shape=(1, 4, 16, 16), filt_size=4, stride=2, pad_type="replicate"),
        dict(shape=(1, 4, 16, 16), filt_size=3, stride=2, pad_type="zero"),
        dict(shape=(2, 4, 16, 16), filt_size=3, stride=2, pad_type="reflect",
             pad_off=1),
        dict(shape=(2, 4, 16, 16), filt_size=1, stride=2, pad_type="reflect"),
    ]
    for cfg in cases:
        key, sub = jax.random.split(key)
        x = jax.random.normal(sub, cfg["shape"], dtype=jnp.float32)
        kwargs = dict(filt_size=cfg["filt_size"], stride=cfg["stride"],
                      pad_type=cfg["pad_type"], pad_off=cfg.get("pad_off", 0))
        y = jax.block_until_ready(downsample_forward(x, **kwargs))
        y_ref = downsample_reference(x, **kwargs)
        assert y.shape == y_ref.shape, (y.shape, y_ref.shape)
        np.testing.assert_allclose(np.asarray(y), np.asarray(y_ref),
                                   rtol=2e-5, atol=2e-5)
    print("KERNEL_OK")
</pallas_src>

<mosaic_0001>
module attributes {stable_mosaic.version = 11 : i64} {
  func.func @_blurpool_kernel(%arg0: i32, %arg1: i32, %arg2: memref<8x16xf32, #tpu.memory_space<vmem>>, %arg3: memref<16x8xf32, #tpu.memory_space<vmem>>, %arg4: memref<1x1x16x16xf32, #tpu.memory_space<vmem>>, %arg5: memref<1x1x8x8xf32, #tpu.memory_space<vmem>>) attributes {dimension_semantics = [#tpu.dimension_semantics<parallel>, #tpu.dimension_semantics<parallel>], iteration_bounds = array<i64: 2, 4>, scalar_prefetch = 0 : i64, scratch_operands = 0 : i64, tpu.core_type = #tpu.core_type<tc>, window_params = [{pipeline_mode = #tpu.pipeline_mode<synchronous>, transform_indices = @transform_0, window_bounds = array<i64: 8, 16>}, {pipeline_mode = #tpu.pipeline_mode<synchronous>, transform_indices = @transform_1, window_bounds = array<i64: 16, 8>}, {transform_indices = @transform_2, window_bounds = array<i64: 1, 1, 16, 16>}, {transform_indices = @transform_3, window_bounds = array<i64: 1, 1, 8, 8>}]} {
    %c0 = arith.constant 0 : index
    %c0_0 = arith.constant 0 : index
    %0 = vector.load %arg2[%c0, %c0_0] : memref<8x16xf32, #tpu.memory_space<vmem>>, vector<8x16xf32>
    %c0_1 = arith.constant 0 : index
    %c0_2 = arith.constant 0 : index
    %1 = vector.load %arg3[%c0_1, %c0_2] : memref<16x8xf32, #tpu.memory_space<vmem>>, vector<16x8xf32>
    %c0_3 = arith.constant 0 : index
    %c0_4 = arith.constant 0 : index
    %c0_5 = arith.constant 0 : index
    %c0_6 = arith.constant 0 : index
    %2 = vector.load %arg4[%c0_3, %c0_4, %c0_5, %c0_6] : memref<1x1x16x16xf32, #tpu.memory_space<vmem>>, vector<1x1x16x16xf32>
    %3 = vector.shape_cast %2 : vector<1x1x16x16xf32> to vector<16x16xf32>
    %cst = arith.constant dense<0.000000e+00> : vector<16x8xf32>
    %4 = tpu.matmul %3, %1, %cst {dimension_numbers = #tpu.dot_dimension_numbers<[1], [0], [0], [1], [0, 0, 1, 1], [], []>} : vector<16x16xf32>, vector<16x8xf32>, vector<16x8xf32> -> vector<16x8xf32>
    %cst_7 = arith.constant dense<0.000000e+00> : vector<8x8xf32>
    %5 = tpu.matmul %0, %4, %cst_7 {dimension_numbers = #tpu.dot_dimension_numbers<[1], [0], [0], [1], [0, 0, 1, 1], [], []>} : vector<8x16xf32>, vector<16x8xf32>, vector<8x8xf32> -> vector<8x8xf32>
    %c0_8 = arith.constant 0 : index
    %c0_9 = arith.constant 0 : index
    %c0_10 = arith.constant 0 : index
    %c0_11 = arith.constant 0 : index
    %6 = vector.load %arg5[%c0_8, %c0_9, %c0_10, %c0_11] : memref<1x1x8x8xf32, #tpu.memory_space<vmem>>, vector<1x1x8x8xf32>
    %7 = vector.shape_cast %6 : vector<1x1x8x8xf32> to vector<8x8xf32>
    %8 = vector.shape_cast %5 : vector<8x8xf32> to vector<1x1x8x8xf32>
    tpu.vector_store %arg5[%c0_8, %c0_9, %c0_10, %c0_11], %8 {strides = array<i32>} : memref<1x1x8x8xf32, #tpu.memory_space<vmem>>, vector<1x1x8x8xf32>,
    return
  }
  func.func @transform_0(%arg0: i32, %arg1: i32) -> (i32, i32) {
    %c0_i32 = arith.constant 0 : i32
    %c0_i32_0 = arith.constant 0 : i32
    %c0_i32_1 = arith.constant 0 : i32
    return %c0_i32, %c0_i32_0 : i32, i32
  }
  func.func @transform_1(%arg0: i32, %arg1: i32) -> (i32, i32) {
    %c0_i32 = arith.constant 0 : i32
    %c0_i32_0 = arith.constant 0 : i32
    %c0_i32_1 = arith.constant 0 : i32
    return %c0_i32, %c0_i32_0 : i32, i32
  }
  func.func @transform_2(%arg0: i32, %arg1: i32) -> (i32, i32, i32, i32) {
    %c0_i32 = arith.constant 0 : i32
    %c0_i32_0 = arith.constant 0 : i32
    %c0_i32_1 = arith.constant 0 : i32
    return %arg0, %arg1, %c0_i32, %c0_i32_0 : i32, i32, i32, i32
  }
  func.func @transform_3(%arg0: i32, %arg1: i32) -> (i32, i32, i32, i32) {
    %c0_i32 = arith.constant 0 : i32
    %c0_i32_0 = arith.constant 0 : i32
    %c0_i32_1 = arith.constant 0 : i32
    return %arg0, %arg1, %c0_i32, %c0_i32_0 : i32, i32, i32, i32
  }
}

</mosaic_0001>

<bundles_post_ra>
// kernel: tpu_custom_call.1
= control target key start
LH: loop header
LB: loop body
LE: loop exit
PB: predicated region body
PF: predicated region fallthrough
CT: control target
= control target key end

     0   :  { %8 = vsyncpa [#allocation3], 0  ;;  %s922_s0 = inlined_call_operand.vmem [shape: f32[8,16], index: 0, kind: input, shape index: {}]   ;;  %s923_s1 = inlined_call_operand.vmem [shape: f32[16,8], index: 1, kind: input, shape index: {}]   ;;  %s924_s2 = inlined_call_operand.hbm [shape: f32[2,4,16,16], index: 2, kind: input, shape index: {}]   ;;  %s925_s3 = inlined_call_operand.hbm [shape: f32[2,4,8,8], index: 3, kind: output, shape index: {}]  }
   0x1   :  { %10 = vsyncpa [#allocation3 + $0x1], 0 }
   0x2   :  { %11 = vsyncpa [#allocation4], 0 }
   0x3   :  { %13 = vsyncpa [#allocation4 + $0x1], 0  ;;  %s745_s12 = smov 0   ;;  %s747_s13 = smov 0  }
   0x4   :  { %s749_s14 = smov 0   ;;  %s751_s15 = smov 0  }
   0x5   :  { %s753_s16 = smov 0   ;;  %s755_s17 = smov 0  }
   0x6   :  { %s757_s18 = smov 0   ;;  %s759_s19 = smov 0  }
   0x7 LB: > { %s471_s20 = sadd.s32 4294967295, %s717_s19   ;;  %s472_s21 = sadd.s32 4294967294, %s717_s19   ;;  %s717_s19 = sphi %s759_s19, %s19_s19   ;;  %s713_s18 = sphi %s757_s18, %s943_s18   ;;  %s709_s17 = sphi %s755_s17, %s942_s17   ;;  %s705_s16 = sphi %s753_s16, %s941_s16   ;;  %s701_s15 = sphi %s751_s15, %s940_s15   ;;  %s697_s14 = sphi %s749_s14, %s939_s14   ;;  %s693_s13 = sphi %s747_s13, %s938_s13   ;;  %s689_s12 = sphi %s745_s12, %s937_s12  }
   0x8   : > { %s28_s22 = sadd.s32 1, %s709_s17  ;;  %s31_s23 = sadd.s32 1, %s713_s18 }
   0x9   : > { %p29_p0 = scmp.ge.s32.totalorder %s28_s22, 4  ;;  %s82_s24 = sadd.s32 1, %s697_s14 }
   0xa   : > { %p89_p1 = scmp.ne.s32.totalorder %s697_s14, %s693_s13  ;;  %p90_p2 = scmp.eq.s32.totalorder %s717_s19, 0 }
   0xb   : > { %s945_s22 = smov (%p29_p0, %s28_s22), 0  ;;  %s947_s23 = smov (!%p29_p0, %s31_s23), %s713_s18 }
   0xc   : > { %928 = sst [smem:[#allocation8_spill]] %s945_s22  ;;  %s78_s25 = ssub.s32 %s709_s17, %s945_s22 }
   0xd   : > { %p798_p3 = por %p90_p2, %p89_p1  ;;  %p33_p4 = scmp.ge.s32.totalorder %s947_s23, 2 }
   0xe   : > { %p95_p5 = scmp.ne.s32.totalorder %s693_s13, %s689_s12  ;;  %p96_p6 = scmp.eq.s32.totalorder %s471_s20, 0 }
   0xf   : > { %p121_p7 = scmp.eq.s32.totalorder %s471_s20, 7  ;;  %s949_s23 = smov (%p33_p4, %s947_s23), 0 }
  0x10   : > { %930 = sst [smem:[#allocation9_spill]] %s949_s23  ;;  %p806_p8 = por %p96_p6, %p95_p5 }
  0x11   : > { %p810_p9 = por %p121_p7, %p89_p1  ;;  %s77_s29 = ssub.s32 %s713_s18, %s949_s23 }
  0x12   : > { %p127_p10 = scmp.eq.s32.totalorder %s472_s21, 7  ;;  %s79_s30 = sor.u32 %s78_s25, %s77_s29 }
  0x13   : > { %p80_p11 = scmp.eq.s32.totalorder %s79_s30, 0  ;;  %p523_p13 = scmp.lt.s32.totalorder %s717_s19, 8 }
  0x14   : > { %p816_p12 = por %p127_p10, %p95_p5  ;;  %s153_s5 = sand.u32 1, %s697_s14  }
  0x15   : > { %s823_s6 = scalar_select %p80_p11, %s697_s14, %s82_s24  }
  0x16   : > { %s475_s7 = sshll.u32 %s153_s5, 4  ;;  %s476_s8 = sshll.u32 %s709_s17, 1 }
  0x17   : > { %s477_s9 = sshll.u32 %s713_s18, 3  ;;  %s157_s10 = scalar_lea.vmem [#allocation2], %s475_s7 }
  0x18   : > { %s166_s11 = sshll.u32 %s157_s10, 4  ;;  %s163_s20 = sadd.s32 %s477_s9, %s476_s8  ;;  %s167_s11 = int_to_ptr.vmem [resolvable:$true] %s166_s11 }
  0x19   : > { %s478_s23 = sshll.u32 %s163_s20, 7  ;;  %p829_p0 = pnand %p523_p13, %p798_p3 }
  0x1a   : > { %s165_s30 = scalar_lea.hbm %s924_s2, %s478_s23  ;;  %s154_s24 = scalar_lea.sflag [#allocation3], %s153_s5 }
  0x1b   : > { %p595_p1 = pneg %p829_p0  ;;  %s606_s22 = scalar_lea.vmem %s167_s11, 256 }
  0x1c   : > { %p607_p2 = scmp.ne.s32.totalorder %s167_s11, %s606_s22  ;;  %s719_s7 = smov [#allocation2]  }
  0x1d   : > { %s611_s8 = sshll.u32 %s719_s7, 4  ;;  %s612_s8 = int_to_ptr.vmem [resolvable:$false] %s611_s8 }
  0x1e   : > { %p609_p4 = pnand %p607_p2, %p595_p1  ;;  %s613_s26 = scalar_lea.vmem %s612_s8, 512 }
  0x1f   : > { %p614_p3 = scmp.lt.s32.totalorder %s167_s11, %s612_s8  ;;  %p615_p6 = scmp.lt.s32.totalorder %s613_s26, %s606_s22 }
  0x20   : > { %p610_p5 = pneg %p609_p4 }
  0x21   : > { %p616_p7 = por %p615_p6, %p614_p3 }
  0x23   : > { %p617_p10 = pnand %p616_p7, %p610_p5 }
  0x25   : > { %620 = shalt.err (!%p617_p10)
}
  0x26   : > { %s720_s9 = smov 128   ;;  %s721_s23 = smov 8  }
  0x27   : > { %518 = dma.hbm_to_vmem [thread:$0]  (!%p829_p0), %s165_s30, 256, %s167_s11, %s154_s24, %s720_s9, %s720_s9, %s721_s23  }
  0x28   : > { %p479_p11 = scmp.ge.s32.totalorder %s717_s19, 1  ;;  %p174_p13 = scmp.lt.s32.totalorder %s717_s19, 9 }
  0x2a   : > { %p175_p1 = pnand %p479_p11, %p174_p13 }
  0x2b   : > { %s843_s5 = sand.u32 (!%p175_p1), 1, %s693_s13  }
  0x2c   : > { %178 = sbr.rel (%p175_p1) target bundleno = 458 (0x1ca), region = 32  ;;  %s480_s22 = sshll.u32 (!%p175_p1), %s843_s5, 4 }
  0x2d   : > { %s181_s10 = scalar_lea.sflag (!%p175_p1), [#allocation3], %s843_s5  ;;  %s184_s20 = scalar_lea.vmem (!%p175_p1), [#allocation2], %s480_s22 }
  0x31   : > { %680 = dma.done.wait (%p806_p8), %s181_s10, 256  }
  0x32   : > { %682 = vsyncadd (%p806_p8), %s181_s10, 4294967040  ;;  %vm212_vm0 = vcmask 130048   ;;  %v209_v0 = vld [vmem:[%s923_s1 + $0x8] sm:$0xff]  ;;  %v208_v1 = vld [vmem:[%s923_s1] sm:$0xff]  ;;  %v722_v4 = vmov 0.0   ;;  %vm723_vm1 = vmmov 0  }
  0x33   : > { %v210_v2 = vld [vmem:[%s184_s20] sm:$0xff]  ;;  %497 = vmatprep.subr.mxu0 %v209_v0  ;;  %v211_v3 = vld [vmem:[%s184_s20 + $0x8] sm:$0xff]  ;;  %504 = vmatprep.subr.mxu1 %v722_v4  ;;  %s481_s24 = sshll.u32 %s843_s5, 3  ;;  %s486_s7 = sshll.u32 %s705_s16, 2  ;;  %vm367_vm2 = vcmask 64512  }
  0x34   : > { %501 = vmatprep.mubr.msk.f32.mxu0 %vm212_vm0, %v210_v2  ;;  %498 = vmatpush3.msra.mxu0 %v209_v0  ;;  %v207_v6 = vld [vmem:[%s922_s0] sm:$0xff]  ;;  %s381_s8 = sadd.s32 %s701_s15, %s486_s7  ;;  %s206_s9 = scalar_lea.vmem [#allocation5], %s481_s24 }
  0x35   : > { %499 = vmatprep.subr.mxu0 %v208_v1  ;;  %508 = vmatprep.mubr.msk.f32.mxu1 %vm723_vm1, %v722_v4  ;;  %s487_s26 = sshll.u32 %s381_s8, 7  ;;  %s385_s23 = sshll.u32 %s206_s9, 4  ;;  %s871_s23 = int_to_ptr.vmem [resolvable:$true] %s385_s23 }
  0x36   : > { %500 = vmatpush3.msra.mxu0 %v208_v1  ;;  %s869_s20 = scalar_lea.hbm %s925_s3, %s487_s26  ;;  %s370_s11 = scalar_lea.sflag [#allocation4], %s843_s5 }
  0x37   : > { %502 = vmatmul.mubr.msk.f32.vlgmr.msra.gmra.mxu0 %vm212_vm0, %v211_v3  ;;  %s621_s16 = scalar_lea.vmem %s871_s23, 128  ;;  %s724_s15 = smov [#allocation5]  }
  0x38   : > { %p622_p8 = scmp.ne.s32.totalorder %s871_s23, %s621_s16  ;;  %s625_s21 = sshll.u32 %s724_s15, 4  ;;  %s626_s21 = int_to_ptr.vmem [resolvable:$false] %s625_s21 }
  0x39   : > { %s627_s25 = scalar_lea.vmem %s626_s21, 256  ;;  %p628_p4 = scmp.lt.s32.totalorder %s871_s23, %s626_s21 }
  0x3a   : > { %p623_p0 = pnand %p622_p8, %p810_p9  ;;  %p629_p5 = scmp.lt.s32.totalorder %s627_s25, %s621_s16 }
  0x3c   : > { %p624_p2 = pneg %p623_p0  ;;  %p630_p3 = por %p629_p5, %p628_p4 }
  0x3e   : > { %p631_p6 = pnand %p630_p3, %p624_p2 }
  0xf7   : > { %v503_v5 = vpop.f32.mrf.mxu0 }
  0xf8   : > { %505 = vmatpush3.msra.mxu1 %v503_v5 }
  0xf9   : > { %v285_v7 = vpop.f32.mrf.mxu0  ;;  %506 = vmatprep.subr.mxu1 %v722_v4 }
  0xfa   : > { %507 = vmatpush3.msra.mxu1 %v285_v7 }
  0xfb   : > { %509 = vmatmul.mubr.msk.f32.vlgmr.msra.gmra.mxu1 %vm212_vm0, %v207_v6 }
 0x1bb   : > { %v363_v8 = vpop.f32.mrf.mxu1 }
 0x1bc   : > { %368 = vst.msk [vmem:[%s206_s9] sm:$0xff] %vm367_vm2, %v363_v8 }
 0x1bd   : > { %v510_v9 = vpop.f32.mrf.mxu1 }
 0x1be   : > { %634 = shalt.err (!%p631_p6)
}
 0x1bf   : > { %s635_s29 = scalar_lea.hbm %s869_s20, 128  ;;  %s639_s30 = scalar_lea.hbm %s925_s3, 1024 }
 0x1c0   : > { %p636_p7 = scmp.ne.s32.totalorder %s869_s20, %s635_s29  ;;  %p640_p13 = scmp.lt.s32.totalorder %s869_s20, %s925_s3 }
 0x1c1   : > { %p641_p1 = scmp.lt.s32.totalorder %s639_s30, %s635_s29 }
 0x1c2   : > { %p637_p10 = pnand %p636_p7, %p810_p9 }
 0x1c3   : > { %p642_p8 = por %p641_p1, %p640_p13 }
 0x1c4   : > { %p638_p11 = pneg %p637_p10 }
 0x1c6   : > { %p643_p0 = pnand %p642_p8, %p638_p11 }
 0x1c8   : > { %646 = shalt.err (!%p643_p0)
}
 0x1c9   : > { %513 = dma.vmem_to_hbm [thread:$0]  (%p810_p9), %s871_s23, 128, %s869_s20, %s370_s11  }
 0x1ca PF: > { %p524_p2 = scmp.ge.s32.totalorder %s717_s19, 2  ;;  %s397_s8 = sand.u32 1, %s689_s12  }
 0x1cb   : > { %s398_s26 = scalar_lea.sflag [#allocation4], %s397_s8 }
 0x1cc   : > { %p520_p4 = pnand %p524_p2, %p816_p12 }
 0x1ce   : > { %p521_p5 = pneg %p520_p4 }
 0x1d0   : > { %684 = dma.done.wait (%p521_p5), %s398_s26, 128  }
 0x1d1   : > { %686 = vsyncadd (%p521_p5), %s398_s26, 4294967168  ;;  %s19_s19 = sadd.s32 1, %s717_s19   ;;  %s935_s28 = sld [smem:[#allocation8_spill]] }
 0x1d2   : > { %p16_p3 = scmp.ge.s32.totalorder %s19_s19, 10   ;;  %s936_s9 = sld [smem:[#allocation9_spill]] }
 0x1d3   : > { %s937_s12 = smov %s693_s13  ;;  %s938_s13 = smov %s697_s14 }
 0x1d4   : > { %s939_s14 = smov %s823_s6  ;;  %s940_s15 = smov %s709_s17 }
 0x1d5   : > { %s941_s16 = smov %s713_s18  ;;  %18 = sbr.rel (!%p16_p3) target bundleno = 7 (0x7), region = 77 }
 0x1d7   : > { %s942_s17 = smov %s935_s28 }
 0x1d8   : > { %s943_s18 = smov %s936_s9 }
 0x1da   :  { %403 = vsyncpa [#allocation3], 1 }
 0x1db   :  { %405 = vsyncpa [#allocation3 + $0x1], 1 }
 0x1dc   :  { %406 = vsyncpa [#allocation4], 1 }
 0x1dd   :  { %408 = vsyncpa [#allocation4 + $0x1], 1 }

</bundles_post_ra>
